<compile_context>
chip_gen: v7x
topology: tpu7x:2x2x1
jax: 0.10.0
libtpu: 0.0.40
codegen_flags: <defaults>
</compile_context>

<pallas_src>
import jax
import jax.numpy as jnp
from jax import lax
from jax.experimental import pallas as pl
from jax.experimental.pallas import tpu as pltpu


_SLAB_ROWS = 64                  # rows per in-kernel slab (multiple of 8/16/32)
_DEF_LANE_WIDTH = 1024           # lane-dense block width (multiple of 128)
_DEF_BLOCK_BYTES = 16 << 20      # ~16 MiB per grid step (amortizes ~0.35us/step)
_DEF_MIN_KERNEL_BYTES = 4 << 20  # below this XLA's fused reduce is near roofline


def _ssq_block_kernel(x_ref, o_ref):
    """One grid step: sum-of-squares of a (tile_r, lane) block -> (8, lane) partial."""
    tile_r, lane = x_ref.shape
    nslabs = tile_r // _SLAB_ROWS

    def body(i, acc):
        start = pl.multiple_of(i * _SLAB_ROWS, _SLAB_ROWS)
        slab = x_ref[pl.ds(start, _SLAB_ROWS), :].astype(jnp.float32)
        sq = slab * slab
        # (SLAB, lane) -> (SLAB//8, 8, lane): splitting the leading dim is
        # layout preserving; the axis-0 sum is pure VPU vreg adds (no XLU).
        return acc + jnp.sum(sq.reshape(_SLAB_ROWS // 8, 8, lane), axis=0)

    o_ref[...] = lax.fori_loop(0, nslabs, body, jnp.zeros((8, lane), jnp.float32))


def _vmem_cap_bytes():
    """Generation-aware VMEM budget ceiling (leave headroom under physical)."""
    try:
        phys = int(pltpu.get_tpu_info().vmem_capacity_bytes)
    except Exception:
        phys = 64 << 20            # conservative (v7x per-TC physical)
    # ~48 MiB on v7x (64 MiB phys), capped at 64 MiB on v5e/v6e (128 MiB phys)
    return min(phys * 3 // 4, 64 << 20)


def disentanglement_loss(expression_params, *,
                         lane_width=_DEF_LANE_WIDTH,
                         target_block_bytes=_DEF_BLOCK_BYTES,
                         min_kernel_bytes=_DEF_MIN_KERNEL_BYTES,
                         force_kernel=False):
    """sum(expression_params ** 2) with a tiled Pallas TPU reduction."""
    assert lane_width % 128 == 0, "lane_width must be a multiple of 128"
    x = expression_params
    flat = x.reshape(-1)
    n = flat.size
    if n == 0:
        return jnp.zeros((), x.dtype)

    dtype = flat.dtype
    itemsize = jnp.dtype(dtype).itemsize

    def _xla_sum(v):
        return jnp.sum(v.astype(jnp.float32) ** 2)

    # Small / mid-sized tensors: XLA's fused reduction is already near roofline.
    if (not force_kernel) and n * itemsize < min_kernel_bytes:
        return _xla_sum(flat).astype(x.dtype)

    # --- block sizing (by bytes, clamped to the VMEM budget) -----------------
    vmem_cap = _vmem_cap_bytes()
    max_block_bytes = max(_SLAB_ROWS * lane_width * itemsize,
                          (vmem_cap - (4 << 20)) // 2)      # double-buffered input
    block_bytes_target = min(target_block_bytes, max_block_bytes)

    row_bytes = lane_width * itemsize
    bulk_rows_raw = n // lane_width                          # full lane-width rows

    tile_r = max(_SLAB_ROWS,
                 (block_bytes_target // row_bytes) // _SLAB_ROWS * _SLAB_ROWS)
    # guarantee >= 2 grid blocks when the input allows it (v7x megacore)
    half_rows = (bulk_rows_raw // 2) // _SLAB_ROWS * _SLAB_ROWS
    if half_rows >= _SLAB_ROWS:
        tile_r = min(tile_r, half_rows)

    grid_r = bulk_rows_raw // tile_r
    tail = None

    if grid_r == 0:
        # Input too small for one aligned block.
        if not force_kernel:
            return _xla_sum(flat).astype(x.dtype)
        # Tiny forced-kernel path: pad to one minimal block (a few KiB, cheap;
        # zero padding does not change the sum of squares).
        tile_r = _SLAB_ROWS
        grid_r = 1
        pad_to = tile_r * lane_width
        flat_bulk = jnp.pad(flat, (0, pad_to - n))
    else:
        bulk_elems = grid_r * tile_r * lane_width
        flat_bulk = flat[:bulk_elems]                        # contiguous prefix, no pad
        if bulk_elems < n:
            tail = flat[bulk_elems:]                         # ragged tail -> XLA

    x2d = flat_bulk.reshape(grid_r * tile_r, lane_width)

    block_bytes = tile_r * lane_width * itemsize
    out_block_bytes = 8 * lane_width * 4
    vmem_bytes = 2 * block_bytes + 2 * out_block_bytes + (2 << 20)
    vmem_bytes = int(min(max(vmem_bytes, 4 << 20), vmem_cap))

    partials = pl.pallas_call(
        _ssq_block_kernel,
        out_shape=jax.ShapeDtypeStruct((grid_r * 8, lane_width), jnp.float32),
        grid_spec=pltpu.PrefetchScalarGridSpec(
            num_scalar_prefetch=0,
            grid=(grid_r,),
            in_specs=[pl.BlockSpec((tile_r, lane_width), lambda i: (i, 0))],
            out_specs=pl.BlockSpec((8, lane_width), lambda i: (i, 0)),
        ),
        compiler_params=pltpu.CompilerParams(
            # each grid step owns its own output block -> no shared accumulator,
            # safe to shard across TensorCores
            dimension_semantics=("parallel",),
            vmem_limit_bytes=vmem_bytes,
        ),
    )(x2d)

    total = jnp.sum(partials)                                # tiny finalize
    if tail is not None:
        total = total + _xla_sum(tail)
    return total.astype(x.dtype)


if __name__ == "__main__":
    key = jax.random.PRNGKey(0)
    k0, k1, k2 = jax.random.split(key, 3)

    # 1) Small, forward-consistent shape (batch=2, expression params=64),
    #    forced through the Pallas kernel (tiny single-block path).
    x_small = jax.random.normal(k0, (2, 64), dtype=jnp.float32)
    loss_small = disentanglement_loss(x_small, force_kernel=True)
    jax.block_until_ready(loss_small)
    ref_small = jnp.sum(x_small.astype(jnp.float32) ** 2)
    assert jnp.allclose(loss_small, ref_small, rtol=1e-5, atol=1e-5), (
        loss_small, ref_small)

    # 2) Multi-block bulk + ragged XLA tail (small tiles to exercise grid > 1).
    x_med = jax.random.normal(k1, (300, 1024), dtype=jnp.float32)
    loss_med = disentanglement_loss(x_med, lane_width=256,
                                    target_block_bytes=64 << 10,
                                    force_kernel=True)
    jax.block_until_ready(loss_med)
    ref_med = jnp.sum(x_med.astype(jnp.float32) ** 2)
    assert jnp.allclose(loss_med, ref_med, rtol=1e-4, atol=1e-4), (
        loss_med, ref_med)

    # 3) bfloat16 input, non-aligned size (bulk + tail, DMA stays in bf16).
    x_bf16 = jax.random.normal(k2, (128, 1025), dtype=jnp.bfloat16)
    loss_bf16 = disentanglement_loss(x_bf16, lane_width=256,
                                     target_block_bytes=32 << 10,
                                     force_kernel=True)
    jax.block_until_ready(loss_bf16)
    ref_bf16 = jnp.sum(x_bf16.astype(jnp.float32) ** 2)
    assert jnp.allclose(loss_bf16.astype(jnp.float32), ref_bf16,
                        rtol=2e-2, atol=2e-2), (loss_bf16, ref_bf16)

    # 4) Fast path (no kernel) for small/mid inputs still matches.
    loss_fast = disentanglement_loss(x_small)
    jax.block_until_ready(loss_fast)
    assert jnp.allclose(loss_fast, ref_small, rtol=1e-5, atol=1e-5)

    print("KERNEL_OK")
</pallas_src>

<mosaic_0001>
module attributes {stable_mosaic.version = 11 : i64} {
  func.func @_ssq_block_kernel(%arg0: i32, %arg1: memref<64x1024xf32, #tpu.memory_space<vmem>>, %arg2: memref<8x1024xf32, #tpu.memory_space<vmem>>) attributes {dimension_semantics = [#tpu.dimension_semantics<parallel>], iteration_bounds = array<i64: 1>, scalar_prefetch = 0 : i64, scratch_operands = 0 : i64, tpu.core_type = #tpu.core_type<tc>, window_params = [{transform_indices = @transform_0, window_bounds = array<i64: 64, 1024>}, {transform_indices = @transform_1, window_bounds = array<i64: 8, 1024>}]} {
    %cst = arith.constant 0.000000e+00 : f32
    %0 = vector.broadcast %cst : f32 to vector<8x1024xf32>
    %c0_i32 = arith.constant 0 : i32
    %c64_i32 = arith.constant 64 : i32
    %1 = arith.muli %c0_i32, %c64_i32 : i32
    %2 = tpu.assume_multiple %1, 64 : i32
    %3 = arith.index_cast %2 : i32 to index
    %c0 = arith.constant 0 : index
    %4 = vector.load %arg1[%3, %c0] : memref<64x1024xf32, #tpu.memory_space<vmem>>, vector<64x1024xf32>
    %5 = arith.mulf %4, %4 : vector<64x1024xf32>
    %6 = vector.shape_cast %5 : vector<64x1024xf32> to vector<8x8x1024xf32>
    %cst_0 = arith.constant dense<0.000000e+00> : vector<8x1024xf32>
    %7 = vector.multi_reduction <add>, %6, %cst_0 [0] : vector<8x8x1024xf32> to vector<8x1024xf32>
    %8 = arith.addf %0, %7 : vector<8x1024xf32>
    %c1_i32 = arith.constant 1 : i32
    %c0_1 = arith.constant 0 : index
    %c0_2 = arith.constant 0 : index
    %9 = vector.load %arg2[%c0_1, %c0_2] : memref<8x1024xf32, #tpu.memory_space<vmem>>, vector<8x1024xf32>
    tpu.vector_store %arg2[%c0_1, %c0_2], %8 {strides = array<i32>} : memref<8x1024xf32, #tpu.memory_space<vmem>>, vector<8x1024xf32>,
    return
  }
  func.func @transform_0(%arg0: i32) -> (i32, i32) {
    %c0_i32 = arith.constant 0 : i32
    %c0_i32_0 = arith.constant 0 : i32
    return %arg0, %c0_i32 : i32, i32
  }
  func.func @transform_1(%arg0: i32) -> (i32, i32) {
    %c0_i32 = arith.constant 0 : i32
    %c0_i32_0 = arith.constant 0 : i32
    return %arg0, %c0_i32 : i32, i32
  }
}

</mosaic_0001>

<bundles_post_ra>
// kernel: tpu_custom_call.1
= control target key start
LH: loop header
LB: loop body
LE: loop exit
PB: predicated region body
PF: predicated region fallthrough
CT: control target
= control target key end

     0   :  { %6 = vsyncpa [#allocation3], 0  ;;  %s331_s0 = inlined_call_operand.hbm [shape: f32[64,1024], index: 0, kind: input, shape index: {}]   ;;  %s332_s1 = inlined_call_operand.hbm [shape: f32[8,1024], index: 1, kind: output, shape index: {}]  }
   0x1   :  { %7 = vsyncpa [#allocation4], 0  ;;  %s293_s6 = smov [#allocation2]   ;;  %s245_s10 = scalar_lea.hbm %s331_s0, 8192 }
   0x2   :  { %s13_s7 = sshll.u32 %s293_s6, 4  ;;  %p246_p0 = scmp.ne.s32.totalorder %s331_s0, %s245_s10  ;;  %s14_s7 = int_to_ptr.vmem [resolvable:$true] %s13_s7 }
   0x3   :  { %p249_p1 = scmp.lt.u32.totalorder %s245_s10, %s331_s0 }
   0x5   :  { %p251_p2 = pnand %p249_p1, %p246_p0 }
   0x7   :  { %254 = shalt.err (!%p251_p2)
}
   0x8   :  { %s255_s15 = scalar_lea.vmem %s14_s7, 8192  ;;  %p260_p4 = scmp.lt.s32.totalorder %s14_s7, %s14_s7 }
   0x9   :  { %p256_p3 = scmp.ne.s32.totalorder %s14_s7, %s255_s15  ;;  %p261_p5 = scmp.lt.s32.totalorder %s255_s15, %s255_s15 }
   0xb   :  { %p262_p6 = por %p261_p5, %p260_p4 }
   0xd   :  { %p263_p7 = pnand %p262_p6, %p256_p3 }
   0xf   :  { %266 = shalt.err (!%p263_p7)
}
  0x10   :  { %s294_s16 = smov 1024   ;;  %s295_s17 = smov 64  }
  0x11   :  { %19 = dma.hbm_to_vmem [thread:$0]  %s331_s0, 8192, %s14_s7, [#allocation3], %s294_s16, %s294_s16, %s295_s17  }
  0x12   :  { %289 = dma.done.wait [#allocation3], 8192  }
  0x13   :  { %290 = vsyncadd [#allocation3], 4294959104  ;;  %v26_v0 = vld [vmem:[#allocation2] sm:$0xff]  ;;  %v27_v10 = vld [vmem:[#allocation2 + $0x8] sm:$0xff]  ;;  %s296_s0 = smov [#allocation5]  }
  0x14   :  { %v34_v1 = vld [vmem:[#allocation2 + $0x40] sm:$0xff]  ;;  %v90_v5 = vmul.f32 %v26_v0, %v26_v0  ;;  %v35_v13 = vld [vmem:[#allocation2 + $0x48] sm:$0xff]  ;;  %v91_v16 = vmul.f32 %v27_v10, %v27_v10  ;;  %v28_v27 = vld [vmem:[#allocation2 + $0x10] sm:$0xff]  ;;  %s232_s20 = sshll.u32 %s296_s0, 4  ;;  %s233_s20 = int_to_ptr.vmem [resolvable:$true] %s232_s20 }
  0x15   :  { %v42_v2 = vld [vmem:[#allocation2 + $0x80] sm:$0xff]  ;;  %v98_v6 = vmul.f32 %v34_v1, %v34_v1  ;;  %v43_v14 = vld [vmem:[#allocation2 + $0x88] sm:$0xff]  ;;  %v99_v20 = vmul.f32 %v35_v13, %v35_v13  ;;  %v36_v28 = vld [vmem:[#allocation2 + $0x50] sm:$0xff]  ;;  %v92_v34 = vmul.f32 %v28_v27, %v28_v27  ;;  %s267_s21 = scalar_lea.vmem %s233_s20, 1024  ;;  %p272_p9 = scmp.lt.s32.totalorder %s233_s20, %s233_s20 }
  0x16   :  { %v50_v3 = vld [vmem:[#allocation2 + $0xc0] sm:$0xff]  ;;  %v106_v7 = vmul.f32 %v42_v2, %v42_v2  ;;  %v51_v15 = vld [vmem:[#allocation2 + $0xc8] sm:$0xff]  ;;  %v107_v21 = vmul.f32 %v43_v14, %v43_v14  ;;  %v44_v32 = vld [vmem:[#allocation2 + $0x90] sm:$0xff]  ;;  %v100_v35 = vmul.f32 %v36_v28, %v36_v28  ;;  %p268_p8 = scmp.ne.s32.totalorder %s233_s20, %s267_s21  ;;  %p273_p10 = scmp.lt.s32.totalorder %s267_s21, %s267_s21 }
  0x17   :  { %v58_v4 = vld [vmem:[#allocation2 + $0x100] sm:$0xff]  ;;  %v114_v11 = vmul.f32 %v50_v3, %v50_v3  ;;  %v154_v12 = vadd.f32 %v98_v6, %v90_v5  ;;  %v59_v18 = vld [vmem:[#allocation2 + $0x108] sm:$0xff]  ;;  %v115_v30 = vmul.f32 %v51_v15, %v51_v15  ;;  %v161_v31 = vadd.f32 %v99_v20, %v91_v16  ;;  %v52_v33 = vld [vmem:[#allocation2 + $0xd0] sm:$0xff] }
  0x18   :  { %v66_v8 = vld [vmem:[#allocation2 + $0x140] sm:$0xff]  ;;  %v67_v19 = vld [vmem:[#allocation2 + $0x148] sm:$0xff]  ;;  %v122_v22 = vmul.f32 %v58_v4, %v58_v4  ;;  %v123_v38 = vmul.f32 %v59_v18, %v59_v18  ;;  %v60_v39 = vld [vmem:[#allocation2 + $0x110] sm:$0xff]  ;;  %v108_v42 = vmul.f32 %v44_v32, %v44_v32  ;;  %v116_v46 = vmul.f32 %v52_v33, %v52_v33  ;;  %p274_p11 = por %p273_p10, %p272_p9 }
  0x19   :  { %v74_v9 = vld [vmem:[#allocation2 + $0x180] sm:$0xff]  ;;  %v130_v23 = vmul.f32 %v66_v8, %v66_v8  ;;  %v155_v25 = vadd.f32 %v154_v12, %v106_v7  ;;  %v75_v26 = vld [vmem:[#allocation2 + $0x188] sm:$0xff]  ;;  %v68_v40 = vld [vmem:[#allocation2 + $0x150] sm:$0xff]  ;;  %v131_v43 = vmul.f32 %v67_v19, %v67_v19  ;;  %v162_v45 = vadd.f32 %v161_v31, %v107_v21 }
  0x1a   :  { %v82_v17 = vld [vmem:[#allocation2 + $0x1c0] sm:$0xff]  ;;  %v138_v24 = vmul.f32 %v74_v9, %v74_v9  ;;  %v83_v29 = vld [vmem:[#allocation2 + $0x1c8] sm:$0xff]  ;;  %v76_v41 = vld [vmem:[#allocation2 + $0x190] sm:$0xff]  ;;  %v139_v44 = vmul.f32 %v75_v26, %v75_v26  ;;  %v168_v51 = vadd.f32 %v100_v35, %v92_v34  ;;  %v124_v58 = vmul.f32 %v60_v39, %v60_v39  ;;  %p275_p12 = pnand %p274_p11, %p268_p8 }
  0x1b   :  { %v146_v36 = vmul.f32 %v82_v17, %v82_v17  ;;  %v156_v37 = vadd.f32 %v155_v25, %v114_v11  ;;  %v29_v47 = vld [vmem:[#allocation2 + $0x18] sm:$0xff]  ;;  %v147_v55 = vmul.f32 %v83_v29, %v83_v29  ;;  %v163_v56 = vadd.f32 %v162_v45, %v115_v30  ;;  %v84_v57 = vld [vmem:[#allocation2 + $0x1d0] sm:$0xff]  ;;  %v30_v60 = vld [vmem:[#allocation2 + $0x20] sm:$0xff] }
  0x1c   :  { %v37_v48 = vld [vmem:[#allocation2 + $0x58] sm:$0xff]  ;;  %v93_v53 = vmul.f32 %v29_v47, %v29_v47  ;;  %v132_v62 = vmul.f32 %v68_v40, %v68_v40  ;;  %v140_v63 = vmul.f32 %v76_v41, %v76_v41  ;;  %v169_v0 = vadd.f32 %v168_v51, %v108_v42  ;;  %v38_v2 = vld [vmem:[#allocation2 + $0x60] sm:$0xff]  ;;  %v31_v20 = vld [vmem:[#allocation2 + $0x28] sm:$0xff] }
  0x1d   :  { %v45_v49 = vld [vmem:[#allocation2 + $0x98] sm:$0xff]  ;;  %v157_v50 = vadd.f32 %v156_v37, %v122_v22  ;;  %v101_v54 = vmul.f32 %v37_v48, %v37_v48  ;;  %v46_v3 = vld [vmem:[#allocation2 + $0xa0] sm:$0xff]  ;;  %v164_v4 = vadd.f32 %v163_v56, %v123_v38  ;;  %v94_v9 = vmul.f32 %v30_v60, %v30_v60  ;;  %v39_v21 = vld [vmem:[#allocation2 + $0x68] sm:$0xff] }
  0x1e   :  { %v53_v52 = vld [vmem:[#allocation2 + $0xd8] sm:$0xff]  ;;  %v109_v59 = vmul.f32 %v45_v49, %v45_v49  ;;  %v148_v11 = vmul.f32 %v84_v57, %v84_v57  ;;  %v170_v12 = vadd.f32 %v169_v0, %v116_v46  ;;  %v54_v13 = vld [vmem:[#allocation2 + $0xe0] sm:$0xff]  ;;  %v102_v14 = vmul.f32 %v38_v2, %v38_v2  ;;  %v47_v27 = vld [vmem:[#allocation2 + $0xa8] sm:$0xff] }
  0x1f   :  { %v158_v61 = vadd.f32 %v157_v50, %v130_v23  ;;  %v61_v1 = vld [vmem:[#allocation2 + $0x118] sm:$0xff]  ;;  %v117_v7 = vmul.f32 %v53_v52, %v53_v52  ;;  %v175_v8 = vadd.f32 %v101_v54, %v93_v53  ;;  %v165_v15 = vadd.f32 %v164_v4, %v131_v43  ;;  %v62_v18 = vld [vmem:[#allocation2 + $0x120] sm:$0xff]  ;;  %v55_v37 = vld [vmem:[#allocation2 + $0xe8] sm:$0xff] }
  0x20   :  { %v69_v5 = vld [vmem:[#allocation2 + $0x158] sm:$0xff]  ;;  %v125_v16 = vmul.f32 %v61_v1, %v61_v1  ;;  %v110_v19 = vmul.f32 %v46_v3, %v46_v3  ;;  %v171_v23 = vadd.f32 %v170_v12, %v124_v58  ;;  %v78_v31 = vld [vmem:[#allocation2 + $0x1a0] sm:$0xff]  ;;  %v118_v32 = vmul.f32 %v54_v13, %v54_v13  ;;  %v63_v42 = vld [vmem:[#allocation2 + $0x128] sm:$0xff] }
  0x21   :  { %v77_v6 = vld [vmem:[#allocation2 + $0x198] sm:$0xff]  ;;  %v159_v10 = vadd.f32 %v158_v61, %v138_v24  ;;  %v176_v17 = vadd.f32 %v175_v8, %v109_v59  ;;  %v133_v25 = vmul.f32 %v69_v5, %v69_v5  ;;  %v166_v28 = vadd.f32 %v165_v15, %v139_v44  ;;  %v70_v24 = vld [vmem:[#allocation2 + $0x160] sm:$0xff]  ;;  %v32_v45 = vld [vmem:[#allocation2 + $0x30] sm:$0xff] }
  0x22   :  { %v141_v26 = vmul.f32 %v77_v6, %v77_v6  ;;  %v85_v29 = vld [vmem:[#allocation2 + $0x1d8] sm:$0xff]  ;;  %v182_v33 = vadd.f32 %v102_v14, %v94_v9  ;;  %v172_v34 = vadd.f32 %v171_v23, %v132_v62  ;;  %v126_v35 = vmul.f32 %v62_v18, %v62_v18  ;;  %v40_v46 = vld [vmem:[#allocation2 + $0x70] sm:$0xff]  ;;  %v86_v52 = vld [vmem:[#allocation2 + $0x1e0] sm:$0xff] }
  0x23   :  { %v160_v22 = vadd.f32 %v159_v10, %v146_v36  ;;  %v177_v30 = vadd.f32 %v176_v17, %v117_v7  ;;  %v95_v38 = vmul.f32 %v31_v20, %v31_v20  ;;  %v103_v39 = vmul.f32 %v39_v21, %v39_v21  ;;  %v48_v50 = vld [vmem:[#allocation2 + $0xb0] sm:$0xff]  ;;  %v71_v54 = vld [vmem:[#allocation2 + $0x168] sm:$0xff]  ;;  %v33_v3 = vld [vmem:[#allocation2 + $0x38] sm:$0xff] }
  0x24   :  { %v167_v40 = vadd.f32 %v166_v28, %v147_v55  ;;  %v183_v36 = vadd.f32 %v182_v33, %v110_v19  ;;  %v111_v43 = vmul.f32 %v47_v27, %v47_v27  ;;  %v173_v44 = vadd.f32 %v172_v34, %v140_v63  ;;  %v56_v58 = vld [vmem:[#allocation2 + $0xf0] sm:$0xff]  ;;  %v79_v59 = vld [vmem:[#allocation2 + $0x1a8] sm:$0xff]  ;;  %v41_v4 = vld [vmem:[#allocation2 + $0x78] sm:$0xff] }
  0x25   :  { %218 = vst [vmem:[#allocation5] sm:$0xff] %v160_v22  ;;  %v178_v41 = vadd.f32 %v177_v30, %v125_v16  ;;  %v149_v47 = vmul.f32 %v85_v29, %v85_v29  ;;  %v134_v48 = vmul.f32 %v70_v24, %v70_v24  ;;  %v142_v49 = vmul.f32 %v78_v31, %v78_v31  ;;  %v49_v5 = vld [vmem:[#allocation2 + $0xb8] sm:$0xff]  ;;  %v64_v8 = vld [vmem:[#allocation2 + $0x130] sm:$0xff]  ;;  %v87_v13 = vld [vmem:[#allocation2 + $0x1e8] sm:$0xff] }
  0x26   :  { %219 = vst [vmem:[#allocation5 + $0x8] sm:$0xff] %v167_v40  ;;  %v184_v53 = vadd.f32 %v183_v36, %v118_v32  ;;  %v119_v56 = vmul.f32 %v55_v37, %v55_v37  ;;  %v189_v57 = vadd.f32 %v103_v39, %v95_v38  ;;  %v174_v55 = vadd.f32 %v173_v44, %v148_v11  ;;  %v57_v15 = vld [vmem:[#allocation2 + $0xf8] sm:$0xff]  ;;  %v72_v17 = vld [vmem:[#allocation2 + $0x170] sm:$0xff] }
  0x27   :  { %v179_v51 = vadd.f32 %v178_v41, %v133_v25  ;;  %v127_v60 = vmul.f32 %v63_v42, %v63_v42  ;;  %v96_v61 = vmul.f32 %v32_v45, %v32_v45  ;;  %v104_v62 = vmul.f32 %v40_v46, %v40_v46  ;;  %v80_v28 = vld [vmem:[#allocation2 + $0x1b0] sm:$0xff]  ;;  %v73_v34 = vld [vmem:[#allocation2 + $0x178] sm:$0xff] }
  0x28   :  { %v185_v1 = vadd.f32 %v184_v53, %v126_v35  ;;  %v190_v63 = vadd.f32 %v189_v57, %v111_v43  ;;  %v112_v2 = vmul.f32 %v48_v50, %v48_v50  ;;  %220 = vst [vmem:[#allocation5 + $0x10] sm:$0xff] %v174_v55  ;;  %v150_v6 = vmul.f32 %v86_v52, %v86_v52  ;;  %v88_v35 = vld [vmem:[#allocation2 + $0x1f0] sm:$0xff]  ;;  %v81_v36 = vld [vmem:[#allocation2 + $0x1b8] sm:$0xff] }
  0x29   :  { %v180_v0 = vadd.f32 %v179_v51, %v141_v26  ;;  %v135_v7 = vmul.f32 %v71_v54, %v71_v54  ;;  %v120_v9 = vmul.f32 %v56_v58, %v56_v58  ;;  %v196_v14 = vadd.f32 %v104_v62, %v96_v61  ;;  %v65_v26 = vld [vmem:[#allocation2 + $0x138] sm:$0xff] }
  0x2a   :  { %v186_v12 = vadd.f32 %v185_v1, %v134_v48  ;;  %v191_v11 = vadd.f32 %v190_v63, %v119_v56  ;;  %v143_v16 = vmul.f32 %v79_v59, %v79_v59  ;;  %v97_v18 = vmul.f32 %v33_v3, %v33_v3 }
  0x2b   :  { %v181_v10 = vadd.f32 %v180_v0, %v149_v47  ;;  %v105_v19 = vmul.f32 %v41_v4, %v41_v4  ;;  %v113_v20 = vmul.f32 %v49_v5, %v49_v5  ;;  %v128_v23 = vmul.f32 %v64_v8, %v64_v8  ;;  %v89_v47 = vld [vmem:[#allocation2 + $0x1f8] sm:$0xff] }
  0x2c   :  { %v187_v21 = vadd.f32 %v186_v12, %v142_v49  ;;  %v192_v22 = vadd.f32 %v191_v11, %v127_v60  ;;  %v197_v25 = vadd.f32 %v196_v14, %v112_v2  ;;  %v151_v27 = vmul.f32 %v87_v13, %v87_v13 }
  0x2d   :  { %221 = vst [vmem:[#allocation5 + $0x18] sm:$0xff] %v181_v10  ;;  %v121_v29 = vmul.f32 %v57_v15, %v57_v15  ;;  %v203_v30 = vadd.f32 %v105_v19, %v97_v18  ;;  %v136_v32 = vmul.f32 %v72_v17, %v72_v17  ;;  %v129_v37 = vmul.f32 %v65_v26, %v65_v26 }
  0x2e   :  { %v188_v24 = vadd.f32 %v187_v21, %v150_v6  ;;  %v193_v31 = vadd.f32 %v192_v22, %v135_v7  ;;  %v198_v33 = vadd.f32 %v197_v25, %v120_v9  ;;  %v144_v40 = vmul.f32 %v80_v28, %v80_v28 }
  0x2f   :  { %v204_v38 = vadd.f32 %v203_v30, %v113_v20  ;;  %v137_v42 = vmul.f32 %v73_v34, %v73_v34  ;;  %v152_v46 = vmul.f32 %v88_v35, %v88_v35  ;;  %v145_v48 = vmul.f32 %v81_v36, %v81_v36 }
  0x30   :  { %222 = vst [vmem:[#allocation5 + $0x20] sm:$0xff] %v188_v24  ;;  %v194_v39 = vadd.f32 %v193_v31, %v143_v16  ;;  %v199_v41 = vadd.f32 %v198_v33, %v128_v23  ;;  %v153_v51 = vmul.f32 %v89_v47, %v89_v47 }
  0x31   :  { %v205_v43 = vadd.f32 %v204_v38, %v121_v29 }
  0x32   :  { %v195_v45 = vadd.f32 %v194_v39, %v151_v27  ;;  %v200_v44 = vadd.f32 %v199_v41, %v136_v32 }
  0x33   :  { %v206_v49 = vadd.f32 %v205_v43, %v129_v37 }
  0x34   :  { %223 = vst [vmem:[#allocation5 + $0x28] sm:$0xff] %v195_v45  ;;  %v201_v50 = vadd.f32 %v200_v44, %v144_v40 }
  0x35   :  { %v207_v52 = vadd.f32 %v206_v49, %v137_v42 }
  0x36   :  { %v202_v53 = vadd.f32 %v201_v50, %v152_v46 }
  0x37   :  { %v208_v54 = vadd.f32 %v207_v52, %v145_v48 }
  0x38   :  { %224 = vst [vmem:[#allocation5 + $0x30] sm:$0xff] %v202_v53 }
  0x39   :  { %v209_v56 = vadd.f32 %v208_v54, %v153_v51 }
  0x3b   :  { %225 = vst [vmem:[#allocation5 + $0x38] sm:$0xff] %v209_v56 }
  0x3c   :  { %278 = shalt.err (!%p275_p12)
}
  0x3d   :  { %s279_s24 = scalar_lea.hbm %s332_s1, 1024 }
  0x3e   :  { %p280_p13 = scmp.ne.s32.totalorder %s332_s1, %s279_s24  ;;  %p283_p0 = scmp.lt.u32.totalorder %s279_s24, %s332_s1 }
  0x40   :  { %p285_p1 = pnand %p283_p0, %p280_p13 }
  0x42   :  { %288 = shalt.err (!%p285_p1)
}
  0x43   :  { %235 = dma.vmem_to_hbm [thread:$0]  %s233_s20, 1024, %s332_s1, [#allocation4]  }
  0x44   :  { %291 = dma.done.wait [#allocation4], 1024  }
  0x45   :  { %292 = vsyncadd [#allocation4], 4294966272 }
  0x46   :  { %239 = vsyncpa [#allocation3], 1 }
  0x47   :  { %240 = vsyncpa [#allocation4], 1 }

</bundles_post_ra>
